<compile_context>
chip_gen: v5e
topology: v5e:2x2
jax: 0.10.0
libtpu: 0.0.40
codegen_flags: <defaults>
</compile_context>

<pallas_src>
import functools

import jax
import jax.numpy as jnp
from jax.experimental import pallas as pl
from jax.experimental.pallas import tpu as pltpu


def calc_padding(kernel_size, dilation, causal, stride=1):
    if causal:
        return (kernel_size - 1) * dilation + 1 - stride
    return ((kernel_size - 1) * dilation + 1 - stride) // 2


def _choose_t_tile(T, pad):
    # Lane-dense tiles (multiples of 128) that evenly divide T and can host the
    # causal halo; otherwise fall back to one full-length tile.  Bigger tiles
    # amortize the ~0.35us per-grid-step overhead; the 2048 cap keeps the
    # double-buffered VMEM footprint bounded (re-tune per generation: v5e/v6e
    # have 128 MiB physical VMEM, v7x only 64 MiB).
    for cand in (2048, 1024, 512, 256, 128):
        if T > cand and T % cand == 0 and pad <= cand:
            return cand
    return T


def _dil_caus_conv_kernel(halo_ref, x_ref, w_ref, b_ref, o_ref, *, ks, df, pad):
    # halo_ref: (1, 1, Cin, pad)  causal left-context for this time tile
    # x_ref:    (1, Cin, Tt)      current time tile (time on the lane axis)
    # w_ref:    (ks, Cout, Cin)   weight-normalized taps (input dtype)
    # b_ref:    (Cout, 1)         bias (f32)
    # o_ref:    (1, Cout, Tt)     output tile (input dtype), lane-dense
    Tt = o_ref.shape[2]
    Cout = o_ref.shape[1]
    cur = x_ref[0]                                              # (Cin, Tt)

    if pad > 0:
        window = jnp.concatenate([halo_ref[0, 0], cur], axis=1)  # (Cin, pad+Tt)
    else:
        window = cur

    acc = jnp.zeros((Cout, Tt), jnp.float32)
    # ks is small & static -> unrolled shifted MXU matmuls (K = Cin each),
    # accumulated in f32.
    # TODO(synk): fold the ks taps into one K = ks*Cin matmul (sublane concat
    # of the taps) to raise MXU occupancy; kept unfused here since the kernel
    # is HBM-bound and the unaligned sublane concat is the riskier lowering.
    for k in range(ks):
        tap = window[:, k * df:k * df + Tt]                     # (Cin, Tt)
        acc = acc + jnp.dot(w_ref[k], tap,
                            preferred_element_type=jnp.float32)
    o_ref[0] = (acc + b_ref[...]).astype(o_ref.dtype)


def dil_caus_conv1d(x, v, g, bias, *, ks, df, state=None):
    """Weight-normalized dilated causal Conv1d.

    x: (B, Cin, T) NCT.  Returns (out (B, Cout, T) in x.dtype,
    new_state (B, Cin, pad))."""
    B, Cin, T = x.shape
    Cout = v.shape[0]
    pad = calc_padding(ks, df, True)

    # weight_norm (dim=0): w[o,i,k] = g[o] * v[o,i,k] / ||v[o]||_F  (tiny, f32)
    v32 = v.astype(jnp.float32)
    g32 = g.astype(jnp.float32).reshape(Cout, 1, 1)
    v_norm = jnp.sqrt(jnp.sum(v32 * v32, axis=(1, 2), keepdims=True))
    w = g32 * v32 / v_norm                                      # (Cout, Cin, ks)
    w_taps = jnp.transpose(w, (2, 0, 1)).astype(x.dtype)        # (ks, Cout, Cin)
    b2d = bias.astype(jnp.float32).reshape(Cout, 1)

    if state is None:
        state = jnp.zeros((B, Cin, pad), x.dtype)
    state = state.astype(x.dtype)

    # next state = last `pad` samples of [state | x], without concatenating x.
    if pad == 0:
        # TODO(synk): PyTorch's `input[:, :, -0:]` returns the whole input for
        # ks == 1; we return the intended empty state instead.
        new_state = x[:, :, T:]
    elif T >= pad:
        new_state = x[:, :, T - pad:]
    else:
        new_state = jnp.concatenate([state[:, :, T:], x], axis=2)

    t_tile = _choose_t_tile(T, pad)
    n_t = T // t_tile

    # Per-tile causal halo: tile 0 uses `state`, tile t>0 uses the tail of
    # tile t-1.  This side tensor is ~pad/T of the input bytes, so we never
    # materialize a padded copy of x and never re-read whole neighbour tiles.
    if pad > 0:
        if n_t == 1:
            halos = state[:, None]                              # (B, 1, Cin, pad)
        else:
            xr = x.reshape(B, Cin, n_t, t_tile)
            tails = xr[:, :, :n_t - 1, t_tile - pad:]           # (B, Cin, nT-1, pad)
            tails = jnp.transpose(tails, (0, 2, 1, 3))          # (B, nT-1, Cin, pad)
            halos = jnp.concatenate([state[:, None], tails], axis=1)
    else:
        halos = jnp.zeros((B, n_t, Cin, 1), x.dtype)            # dummy (unused)
    hw = halos.shape[3]

    kernel = functools.partial(_dil_caus_conv_kernel, ks=ks, df=df, pad=pad)
    out = pl.pallas_call(
        kernel,
        out_shape=jax.ShapeDtypeStruct((B, Cout, T), x.dtype),
        grid_spec=pltpu.PrefetchScalarGridSpec(
            num_scalar_prefetch=0,
            grid=(B, n_t),
            in_specs=[
                pl.BlockSpec((1, 1, Cin, hw), lambda b, t: (b, t, 0, 0)),
                pl.BlockSpec((1, Cin, t_tile), lambda b, t: (b, 0, t)),
                pl.BlockSpec((ks, Cout, Cin), lambda b, t: (0, 0, 0)),
                pl.BlockSpec((Cout, 1), lambda b, t: (0, 0)),
            ],
            out_specs=pl.BlockSpec((1, Cout, t_tile), lambda b, t: (b, 0, t)),
        ),
        compiler_params=pltpu.CompilerParams(
            # Independent tiles -> both TensorCores get work even when B == 1.
            dimension_semantics=("parallel", "parallel"),
            # > v5e's 16 MiB scoped default; harmless (<= physical) elsewhere.
            vmem_limit_bytes=32 * 1024 * 1024),
    )(halos, x, w_taps, b2d)

    return out, new_state


def _reference(x, v, g, bias, ks, df, state=None):
    # plain-JAX reference of the same math (for a sanity check)
    pad = calc_padding(ks, df, True)
    Cout = v.shape[0]
    v32 = v.astype(jnp.float32)
    g32 = g.astype(jnp.float32).reshape(Cout, 1, 1)
    vn = jnp.sqrt(jnp.sum(v32 * v32, axis=(1, 2), keepdims=True))
    w = g32 * v32 / vn                                          # (Cout, Cin, ks)
    if state is None:
        state = jnp.zeros((x.shape[0], x.shape[1], pad), x.dtype)
    x_cat = jnp.concatenate([state, x], axis=2).astype(jnp.float32)
    T = x.shape[2]
    out = jnp.zeros((x.shape[0], Cout, T), jnp.float32)
    for k in range(ks):
        xk = x_cat[:, :, k * df:k * df + T]
        out = out + jnp.einsum('oi,bit->bot', w[:, :, k], xk,
                               precision=jax.lax.Precision.HIGHEST)
    out = out + bias.astype(jnp.float32)[None, :, None]
    new_state = x_cat[:, :, x_cat.shape[2] - pad:]
    return out, new_state


if __name__ == "__main__":
    key = jax.random.PRNGKey(0)
    k1, k2, k3, k4 = jax.random.split(key, 4)

    B, Cin, Cout, ks, df = 2, 4, 8, 3, 2
    pad = calc_padding(ks, df, True)

    v = jax.random.normal(k2, (Cout, Cin, ks), jnp.float32) * 0.1
    g = jnp.sqrt(jnp.sum(v * v, axis=(1, 2), keepdims=True))   # weight_norm init
    bias = jax.random.normal(k3, (Cout,), jnp.float32) * 0.01

    # 1) module-sized single-tile case
    T = 16
    x = jax.random.normal(k1, (B, Cin, T), jnp.float32)
    out, st = dil_caus_conv1d(x, v, g, bias, ks=ks, df=df)
    out = jax.block_until_ready(out)
    st = jax.block_until_ready(st)
    ref_out, ref_st = _reference(x, v, g, bias, ks, df)
    assert out.shape == (B, Cout, T) and st.shape == (B, Cin, pad)
    assert jnp.allclose(out, ref_out, atol=1e-4, rtol=1e-4)
    assert jnp.allclose(st, ref_st)

    # 2) streaming: two chunks with carried state == one long call
    xa, xb = x[:, :, :8], x[:, :, 8:]
    oa, sa = dil_caus_conv1d(xa, v, g, bias, ks=ks, df=df)
    ob, sb = dil_caus_conv1d(xb, v, g, bias, ks=ks, df=df, state=sa)
    chained = jnp.concatenate([oa, ob], axis=2)
    assert jnp.allclose(chained, ref_out, atol=1e-4, rtol=1e-4)
    assert jnp.allclose(sb, ref_st)

    # 3) time-tiled path (grid over T) with cross-tile causal halo
    T2 = 256
    x2 = jax.random.normal(k4, (B, Cin, T2), jnp.float32)
    out2, st2 = dil_caus_conv1d(x2, v, g, bias, ks=ks, df=df)
    out2 = jax.block_until_ready(out2)
    ref2, ref_st2 = _reference(x2, v, g, bias, ks, df)
    assert jnp.allclose(out2, ref2, atol=1e-4, rtol=1e-4)
    assert jnp.allclose(st2, ref_st2)

    print("KERNEL_OK")
</pallas_src>

<mosaic_0001>
module attributes {stable_mosaic.version = 11 : i64} {
  func.func @_dil_caus_conv_kernel(%arg0: i32, %arg1: i32, %arg2: memref<1x1x4x4xf32, #tpu.memory_space<vmem>>, %arg3: memref<1x4x16xf32, #tpu.memory_space<vmem>>, %arg4: memref<3x8x4xf32, #tpu.memory_space<vmem>>, %arg5: memref<8x1xf32, #tpu.memory_space<vmem>>, %arg6: memref<1x8x16xf32, #tpu.memory_space<vmem>>) attributes {dimension_semantics = [#tpu.dimension_semantics<parallel>, #tpu.dimension_semantics<parallel>], iteration_bounds = array<i64: 2, 1>, scalar_prefetch = 0 : i64, scratch_operands = 0 : i64, tpu.core_type = #tpu.core_type<tc>, window_params = [{transform_indices = @transform_0, window_bounds = array<i64: 1, 1, 4, 4>}, {transform_indices = @transform_1, window_bounds = array<i64: 1, 4, 16>}, {pipeline_mode = #tpu.pipeline_mode<synchronous>, transform_indices = @transform_2, window_bounds = array<i64: 3, 8, 4>}, {pipeline_mode = #tpu.pipeline_mode<synchronous>, transform_indices = @transform_3, window_bounds = array<i64: 8, 1>}, {transform_indices = @transform_4, window_bounds = array<i64: 1, 8, 16>}]} {
    %c0 = arith.constant 0 : index
    %c0_0 = arith.constant 0 : index
    %c0_1 = arith.constant 0 : index
    %0 = vector.load %arg3[%c0, %c0_0, %c0_1] : memref<1x4x16xf32, #tpu.memory_space<vmem>>, vector<1x4x16xf32>
    %1 = vector.shape_cast %0 : vector<1x4x16xf32> to vector<4x16xf32>
    %c0_2 = arith.constant 0 : index
    %c0_3 = arith.constant 0 : index
    %c0_4 = arith.constant 0 : index
    %c0_5 = arith.constant 0 : index
    %2 = vector.load %arg2[%c0_2, %c0_3, %c0_4, %c0_5] : memref<1x1x4x4xf32, #tpu.memory_space<vmem>>, vector<1x1x4x4xf32>
    %3 = vector.shape_cast %2 : vector<1x1x4x4xf32> to vector<4x4xf32>
    %4 = tpu.concatenate %3, %1 in 1 : vector<4x4xf32>, vector<4x16xf32> -> vector<4x20xf32>
    %cst = arith.constant 0.000000e+00 : f32
    %5 = vector.broadcast %cst : f32 to vector<8x16xf32>
    %6 = vector.extract_strided_slice %4 {offsets = [0, 0], sizes = [4, 16], strides = [1, 1]} : vector<4x20xf32> to vector<4x16xf32>
    %c0_6 = arith.constant 0 : index
    %c0_7 = arith.constant 0 : index
    %c0_8 = arith.constant 0 : index
    %7 = vector.load %arg4[%c0_6, %c0_7, %c0_8] : memref<3x8x4xf32, #tpu.memory_space<vmem>>, vector<1x8x4xf32>
    %8 = vector.shape_cast %7 : vector<1x8x4xf32> to vector<8x4xf32>
    %cst_9 = arith.constant dense<0.000000e+00> : vector<8x16xf32>
    %9 = tpu.matmul %8, %6, %cst_9 {dimension_numbers = #tpu.dot_dimension_numbers<[1], [0], [0], [1], [0, 0, 1, 1], [], []>} : vector<8x4xf32>, vector<4x16xf32>, vector<8x16xf32> -> vector<8x16xf32>
    %10 = arith.addf %5, %9 : vector<8x16xf32>
    %11 = vector.extract_strided_slice %4 {offsets = [0, 2], sizes = [4, 16], strides = [1, 1]} : vector<4x20xf32> to vector<4x16xf32>
    %c1 = arith.constant 1 : index
    %c0_10 = arith.constant 0 : index
    %c0_11 = arith.constant 0 : index
    %12 = vector.load %arg4[%c1, %c0_10, %c0_11] : memref<3x8x4xf32, #tpu.memory_space<vmem>>, vector<1x8x4xf32>
    %13 = vector.shape_cast %12 : vector<1x8x4xf32> to vector<8x4xf32>
    %cst_12 = arith.constant dense<0.000000e+00> : vector<8x16xf32>
    %14 = tpu.matmul %13, %11, %cst_12 {dimension_numbers = #tpu.dot_dimension_numbers<[1], [0], [0], [1], [0, 0, 1, 1], [], []>} : vector<8x4xf32>, vector<4x16xf32>, vector<8x16xf32> -> vector<8x16xf32>
    %15 = arith.addf %10, %14 : vector<8x16xf32>
    %16 = vector.extract_strided_slice %4 {offsets = [0, 4], sizes = [4, 16], strides = [1, 1]} : vector<4x20xf32> to vector<4x16xf32>
    %c2 = arith.constant 2 : index
    %c0_13 = arith.constant 0 : index
    %c0_14 = arith.constant 0 : index
    %17 = vector.load %arg4[%c2, %c0_13, %c0_14] : memref<3x8x4xf32, #tpu.memory_space<vmem>>, vector<1x8x4xf32>
    %18 = vector.shape_cast %17 : vector<1x8x4xf32> to vector<8x4xf32>
    %cst_15 = arith.constant dense<0.000000e+00> : vector<8x16xf32>
    %19 = tpu.matmul %18, %16, %cst_15 {dimension_numbers = #tpu.dot_dimension_numbers<[1], [0], [0], [1], [0, 0, 1, 1], [], []>} : vector<8x4xf32>, vector<4x16xf32>, vector<8x16xf32> -> vector<8x16xf32>
    %20 = arith.addf %15, %19 : vector<8x16xf32>
    %c0_16 = arith.constant 0 : index
    %c0_17 = arith.constant 0 : index
    %21 = vector.load %arg5[%c0_16, %c0_17] : memref<8x1xf32, #tpu.memory_space<vmem>>, vector<8x1xf32>
    %22 = vector.broadcast %21 : vector<8x1xf32> to vector<8x16xf32>
    %23 = arith.addf %20, %22 : vector<8x16xf32>
    %c0_18 = arith.constant 0 : index
    %c0_19 = arith.constant 0 : index
    %c0_20 = arith.constant 0 : index
    %24 = vector.load %arg6[%c0_18, %c0_19, %c0_20] : memref<1x8x16xf32, #tpu.memory_space<vmem>>, vector<1x8x16xf32>
    %25 = vector.shape_cast %24 : vector<1x8x16xf32> to vector<8x16xf32>
    %26 = vector.shape_cast %23 : vector<8x16xf32> to vector<1x8x16xf32>
    tpu.vector_store %arg6[%c0_18, %c0_19, %c0_20], %26 {strides = array<i32>} : memref<1x8x16xf32, #tpu.memory_space<vmem>>, vector<1x8x16xf32>,
    return
  }
  func.func @transform_0(%arg0: i32, %arg1: i32) -> (i32, i32, i32, i32) {
    %c0_i32 = arith.constant 0 : i32
    %c0_i32_0 = arith.constant 0 : i32
    %c0_i32_1 = arith.constant 0 : i32
    return %arg0, %arg1, %c0_i32, %c0_i32_0 : i32, i32, i32, i32
  }
  func.func @transform_1(%arg0: i32, %arg1: i32) -> (i32, i32, i32) {
    %c0_i32 = arith.constant 0 : i32
    %c0_i32_0 = arith.constant 0 : i32
    return %arg0, %c0_i32, %arg1 : i32, i32, i32
  }
  func.func @transform_2(%arg0: i32, %arg1: i32) -> (i32, i32, i32) {
    %c0_i32 = arith.constant 0 : i32
    %c0_i32_0 = arith.constant 0 : i32
    %c0_i32_1 = arith.constant 0 : i32
    %c0_i32_2 = arith.constant 0 : i32
    return %c0_i32, %c0_i32_0, %c0_i32_1 : i32, i32, i32
  }
  func.func @transform_3(%arg0: i32, %arg1: i32) -> (i32, i32) {
    %c0_i32 = arith.constant 0 : i32
    %c0_i32_0 = arith.constant 0 : i32
    %c0_i32_1 = arith.constant 0 : i32
    return %c0_i32, %c0_i32_0 : i32, i32
  }
  func.func @transform_4(%arg0: i32, %arg1: i32) -> (i32, i32, i32) {
    %c0_i32 = arith.constant 0 : i32
    %c0_i32_0 = arith.constant 0 : i32
    return %arg0, %c0_i32, %arg1 : i32, i32, i32
  }
}

</mosaic_0001>

<bundles_post_ra>
// kernel: tpu_custom_call.1
= control target key start
LH: loop header
LB: loop body
LE: loop exit
PB: predicated region body
PF: predicated region fallthrough
CT: control target
= control target key end

     0   :  { %9 = vsyncpa [#allocation3], 0  ;;  %s762_s0 = inlined_call_operand.vmem [shape: f32[2,1,4,4], index: 0, kind: input, shape index: {}]   ;;  %s763_s1 = inlined_call_operand.vmem [shape: f32[2,4,16], index: 1, kind: input, shape index: {}]   ;;  %s764_s2 = inlined_call_operand.vmem [shape: f32[3,8,4], index: 2, kind: input, shape index: {}]   ;;  %s765_s3 = inlined_call_operand.vmem [shape: f32[8,1], index: 3, kind: input, shape index: {}]   ;;  %s766_s4 = inlined_call_operand.hbm [shape: f32[2,8,16], index: 4, kind: output, shape index: {}]  }
   0x1   :  { %11 = vsyncpa [#allocation3 + $0x1], 0  ;;  %s643_s15 = smov 0   ;;  %s645_s16 = smov 0  }
   0x2   :  { %s647_s17 = smov 0   ;;  %s649_s18 = smov 0  }
   0x3   :  { %s651_s19 = smov 0   ;;  %s653_s20 = smov 0  }
   0x4 LB: > { %s453_s21 = sadd.s32 4294967295, %s612_s20   ;;  %s454_s22 = sadd.s32 4294967294, %s612_s20   ;;  %s612_s20 = sphi %s653_s20, %s17_s20   ;;  %s608_s19 = sphi %s651_s19, %s773_s19   ;;  %s604_s18 = sphi %s649_s18, %s772_s18   ;;  %s600_s17 = sphi %s647_s17, %s771_s17   ;;  %s596_s16 = sphi %s645_s16, %s770_s16   ;;  %s592_s15 = sphi %s643_s15, %s769_s15  }
   0x5   : > { %s29_s23 = sadd.s32 1, %s608_s19  ;;  %s136_s24 = sadd.s32 1, %s600_s17 }
   0x6   : > { %p31_p0 = scmp.ge.s32.totalorder %s29_s23, 2  ;;  %p146_p1 = scmp.ne.s32.totalorder %s600_s17, %s596_s16 }
   0x7   : > { %p147_p2 = scmp.eq.s32.totalorder %s453_s21, 1  ;;  %p152_p3 = scmp.ne.s32.totalorder %s596_s16, %s592_s15 }
   0x8   : > { %s775_s23 = smov (%p31_p0, %s29_s23), 0  ;;  %p153_p5 = scmp.eq.s32.totalorder %s454_s22, 1 }
   0x9   : > { %p683_p4 = por %p147_p2, %p146_p1  ;;  %s131_s26 = ssub.s32 %s608_s19, %s775_s23 }
   0xa   : > { %p457_p6 = scmp.ge.s32.totalorder %s612_s20, 1  ;;  %p134_p7 = scmp.eq.s32.totalorder %s131_s26, 0 }
   0xb   : > { %p690_p8 = por %p153_p5, %p152_p3  ;;  %p197_p9 = scmp.lt.s32.totalorder %s612_s20, 3 }
   0xc   : > { %s696_s28 = scalar_select %p134_p7, %s600_s17, %s136_s24  }
   0xd   : > { %p198_p10 = pnand %p457_p6, %p197_p9 }
   0xe   : > { %p232_p11 = scmp.lt.s32.totalorder (!%p198_p10), %s604_s18, 1  ;;  %s614_s8 = smov (!%p198_p10), 4  }
   0xf   : > { %201 = sbr.rel (%p198_p10) target bundleno = 396 (0x18c), region = 36  ;;  %s615_s12 = smov (!%p198_p10), 126  }
  0x10   : > { %s616_s13 = smov (!%p198_p10), 124   ;;  %s229_s6 = sand.u32 (!%p198_p10), 1, %s596_s16  }
  0x11   : > { %s351_s21 = scalar_lea.sflag (!%p198_p10), [#allocation3], %s229_s6 }
  0x14   : > { %s233_s29 = scalar_select %p232_p11, %s604_s18, 1  ;;  %vm252_vm0 = vcmask 31744   ;;  %vm263_vm1 = vcmask 1043456   ;;  %v254_v4 = vld [vmem:[%s764_s2] sm:$0xff]  ;;  %v617_v6 = vmov 0   ;;  %v466_v7 = vld [vmem:[%s764_s2 + $0x10] sm:$0xff] }
  0x15   : > { %v341_v5 = vld [vmem:[%s765_s3] sm:$0xff]  ;;  %532 = vset.pattern.permute.xlu1 %v617_v6  ;;  %533 = vset.pattern.permute.xlu0 %v617_v6  ;;  %v461_v8 = vld [vmem:[%s764_s2 + $0x8] sm:$0xff]  ;;  %vm348_vm2 = vcmask 130048  }
  0x16   : > { %s459_s30 = sshll.u32 %s233_s29, 2  ;;  %s554_s29 = scalar_lea.hbm %s766_s4, 16 }
  0x17   : > { %s245_s7 = scalar_lea.vmem %s763_s1, %s459_s30  ;;  %s238_s11 = scalar_lea.vmem %s762_s0, %s459_s30 }
  0x18   : > { %v246_v0 = vld [vmem:[%s245_s7] sm:$0xf]  ;;  %s458_s7 = sshll.u32 %s229_s6, 3 }
  0x19   : > { %249 = vrot.lane.b32.xlu0 %v246_v0, %s614_s8  ;;  %v247_v1 = vld [vmem:[%s238_s11] sm:$0xf]  ;;  %s470_s8 = sshll.u32 %s604_s18, 3 }
  0x1a   : > { %s362_s11 = scalar_lea.hbm %s766_s4, %s470_s8 }
  0x1b   : > { %s366_s14 = sshll.u32 %s362_s11, 4  ;;  %s367_s14 = int_to_ptr.hbm [resolvable:$true] %s366_s14 }
  0x1c   : > { %s548_s22 = sshra.s32 %s367_s14, 4  ;;  %s549_s22 = int_to_ptr.hbm [resolvable:$true] %s548_s22 }
  0x1d   : > { %s550_s18 = scalar_lea.hbm %s549_s22, 8  ;;  %p555_p1 = scmp.lt.s32.totalorder %s549_s22, %s766_s4 }
  0x1e   : > { %p551_p12 = scmp.ne.s32.totalorder %s549_s22, %s550_s18  ;;  %p556_p2 = scmp.lt.s32.totalorder %s554_s29, %s550_s18 }
  0x20   : > { %p552_p13 = pnand %p551_p12, %p683_p4  ;;  %p557_p3 = por %p556_p2, %p555_p1 }
  0x22   : > { %p553_p0 = pneg %p552_p13 }
  0x24   : > { %p558_p5 = pnand %p557_p3, %p553_p0 }
  0x8b   : > { %v250_v2 = vpop.permute.xlu0 %249 }
  0x8c   : > { %v253_v3 = vsel %vm252_vm0, %v247_v1, %v250_v2 }
  0x8d   : > { %258 = vrot.lane.b32.xlu1 %v253_v3, %s615_s12  ;;  %313 = vrot.lane.b32.xlu0 %v253_v3, %s616_s13  ;;  %s231_s12 = scalar_lea.vmem [#allocation2], %s458_s7 }
  0x8e   : > { %464 = vmatpush.msk.msra.mxu1 %vm263_vm1, %v253_v3  ;;  %s364_s13 = sshll.u32 %s231_s12, 4  ;;  %s365_s13 = int_to_ptr.vmem [resolvable:$true] %s364_s13 }
  0x8f   : > { %465 = vmatmul.msk.f32.vlgmr.msra.gmra.mxu1 %vm252_vm0, %v254_v4 }
  0x95   : > { %344 = vperm.xlu1 %532, %v341_v5  }
  0xff   : > { %v259_v9 = vpop.permute.xlu1 %258  ;;  %v314_v10 = vpop.permute.xlu0 %313 }
 0x100   : > { %462 = vmatpush.msk.msra.mxu0 %vm263_vm1, %v259_v9  ;;  %467 = vmatpush.msk.msra.mxu2 %vm263_vm1, %v314_v10 }
 0x101   : > { %468 = vmatmul.msk.f32.vlgmr.msra.gmra.mxu2 %vm252_vm0, %v466_v7  ;;  %463 = vmatmul.msk.f32.vlgmr.msra.gmra.mxu0 %vm252_vm0, %v461_v8 }
 0x107   : > { %v345_v15 = vpop.permute.xlu1 %344 }
 0x10c   : > { %v308_v12 = vpop.f32.mrf.mxu1 }
 0x17e   : > { %v283_v11 = vpop.f32.mrf.mxu0 }
 0x17f   : > { %v309_v13 = vadd.f32 %v308_v12, %v283_v11 }
 0x184   : > { %v337_v14 = vpop.f32.mrf.mxu2 }
 0x185   : > { %v340_v16 = vadd.f32 %v337_v14, %v309_v13 }
 0x187   : > { %v347_v17 = vadd.f32 %v345_v15, %v340_v16 }
 0x189   : > { %349 = vst.msk [vmem:[%s231_s12] sm:$0xff] %vm348_vm2, %v347_v17 }
 0x18a   : > { %561 = shalt.err (!%p558_p5)
}
 0x18b   : > { %473 = dma.vmem_to_hbm [thread:$0]  (%p683_p4), %s365_s13, 128, %s367_s14, %s351_s21  }
 0x18c PF: > { %p479_p6 = scmp.ge.s32.totalorder %s612_s20, 2  ;;  %s378_s6 = sand.u32 1, %s592_s15  }
 0x18d   : > { %s379_s7 = scalar_lea.sflag [#allocation3], %s378_s6 }
 0x18e   : > { %p476_p7 = pnand %p479_p6, %p690_p8 }
 0x190   : > { %p477_p9 = pneg %p476_p7 }
 0x192   : > { %587 = dma.done.wait (%p477_p9), %s379_s7, 128  }
 0x193   : > { %589 = vsyncadd (%p477_p9), %s379_s7, 4294967168  ;;  %s17_s20 = sadd.s32 1, %s612_s20   ;;  %s769_s15 = smov %s596_s16 }
 0x194   : > { %p14_p10 = scmp.ge.s32.totalorder %s17_s20, 4   ;;  %s770_s16 = smov %s600_s17 }
 0x195   : > { %s771_s17 = smov %s696_s28  ;;  %s772_s18 = smov %s608_s19 }
 0x196   : > { %s773_s19 = smov %s775_s23  ;;  %16 = sbr.rel (!%p14_p10) target bundleno = 4 (0x4), region = 76 }
 0x19b   :  { %385 = vsyncpa [#allocation3], 1 }
 0x19c   :  { %387 = vsyncpa [#allocation3 + $0x1], 1 }

</bundles_post_ra>
